<compile_context>
chip_gen: v7x
topology: tpu7x:2x2x1
jax: 0.10.0
libtpu: 0.0.40
codegen_flags: <defaults>
</compile_context>

<pallas_src>
import functools

import jax
import jax.numpy as jnp
from jax import lax
from jax.experimental import pallas as pl
from jax.experimental.pallas import tpu as pltpu

_LANES = 128
_SUBLANES = 8


def _elementwise_loss(pd, p, *, margin, inv_margin, robust):
    """Per-element loss in f32.  Shared by the kernel and the jnp fallback."""
    pd = pd.astype(jnp.float32)
    p = p.astype(jnp.float32)
    pos = p * (pd * pd)
    hinge = jnp.maximum(margin - pd, 0.0)
    hinge_sq = hinge * hinge
    if robust:
        # (1/margin)*clamp(sqrt(pd)*(margin-pd),0)^2 == (1/margin)*pd*clamp(margin-pd,0)^2
        neg = (inv_margin * pd) * hinge_sq
    else:
        neg = hinge_sq
    # Keep the general blend (correct for any P in [0,1], not just binary).
    return pos + (1.0 - p) * neg


def _noise_robust_loss_kernel(pd_ref, p_ref, out_ref, *, margin, inv_margin,
                              robust, block_rows, blocks_per_core,
                              total_blocks, rows_total):
    c = pl.program_id(0)   # "parallel" axis (TensorCore shard)
    i = pl.program_id(1)   # "arbitrary" reduction axis (row blocks)

    @pl.when(i == 0)
    def _():
        out_ref[...] = jnp.zeros_like(out_ref)

    loss = _elementwise_loss(pd_ref[...], p_ref[...], margin=margin,
                             inv_margin=inv_margin, robust=robust)

    # Mask rows that are (a) beyond the real array (ragged last block read by
    # Pallas with unspecified contents) or (b) part of a duplicate block that a
    # core re-reads because its work range overhangs total_blocks.  The sub-128
    # tail inside the last real row is padded with (pd=0, P=1), which
    # contributes exactly 0 in every branch, so it needs no mask.
    blk = c * blocks_per_core + i
    row0 = jnp.minimum(blk, total_blocks - 1) * block_rows
    row_ids = row0 + lax.broadcasted_iota(jnp.int32, (block_rows, _LANES), 0)
    limit = jnp.where(blk < total_blocks, rows_total, 0)
    loss = jnp.where(row_ids < limit, loss, 0.0)

    # Fold (block_rows, 128) -> (8, 128) with VPU adds only (the reshape splits
    # the sublane-major dim, so it is layout-free); accumulate into the
    # resident output block.  No XLU reduce, no SMEM round trip per step.
    out_ref[...] += jnp.sum(loss.reshape(-1, _SUBLANES, _LANES), axis=0)


def noise_robust_loss(pair_dist, P, margin, use_robust_loss, start_fine, *,
                      block_rows=None, num_cores=2, small_n_threshold=1 << 15):
    """pair_dist, P: 1-D arrays of length N. margin / flags are Python statics."""
    n = pair_dist.shape[0]
    margin = float(margin)
    inv_margin = 1.0 / margin
    inv_2n = 1.0 / (2.0 * float(n))
    robust = (int(use_robust_loss) == 1) and bool(start_fine)

    # Small N: launch + per-step overhead dominates; plain XLA is faster.
    if n < small_n_threshold:
        return jnp.sum(_elementwise_loss(pair_dist, P, margin=margin,
                                         inv_margin=inv_margin,
                                         robust=robust)) * inv_2n

    # --- lane-dense layout without a full-array pad --------------------------
    # Only pad the final partial 128-lane row (and up to 8 rows for tiny
    # inputs).  Pad values (pd=0, P=1) contribute exactly 0 loss.  When N is a
    # multiple of 128 (the common case) there is no pad at all.
    padded_n = -(-n // _LANES) * _LANES
    padded_n = max(padded_n, _SUBLANES * _LANES)
    if padded_n != n:
        pair_dist = jnp.pad(pair_dist, (0, padded_n - n), constant_values=0)
        P = jnp.pad(P, (0, padded_n - n), constant_values=1)
    rows = padded_n // _LANES
    pd2d = pair_dist.reshape(rows, _LANES)
    p2d = P.reshape(rows, _LANES)

    # --- block / grid selection ----------------------------------------------
    # 1 MiB f32 per input tile (2048 x 128) by default; block_rows is kept a
    # multiple of 8 and <= rows so only the standard ragged *last* block needs
    # masking.
    max_block_rows = (rows // _SUBLANES) * _SUBLANES
    if block_rows is None:
        block_rows = 2048
    block_rows = max(_SUBLANES, min((block_rows // _SUBLANES) * _SUBLANES,
                                    max_block_rows))

    total_blocks = pl.cdiv(rows, block_rows)
    nc = max(1, int(num_cores))
    blocks_per_core = pl.cdiv(total_blocks, nc)

    kernel = functools.partial(
        _noise_robust_loss_kernel,
        margin=margin, inv_margin=inv_margin, robust=robust,
        block_rows=block_rows, blocks_per_core=blocks_per_core,
        total_blocks=total_blocks, rows_total=rows)

    def in_map(c, i):
        # Clamp so an overhanging block never indexes past the array; its
        # contribution is masked to zero in the kernel.
        return (jnp.minimum(c * blocks_per_core + i, total_blocks - 1), 0)

    partials = pl.pallas_call(
        kernel,
        out_shape=jax.ShapeDtypeStruct((nc * _SUBLANES, _LANES), jnp.float32),
        grid=(nc, blocks_per_core),
        in_specs=[
            pl.BlockSpec((block_rows, _LANES), in_map),
            pl.BlockSpec((block_rows, _LANES), in_map),
        ],
        out_specs=pl.BlockSpec((_SUBLANES, _LANES), lambda c, i: (c, 0)),
        compiler_params=pltpu.CompilerParams(
            dimension_semantics=("parallel", "arbitrary")),
    )(pd2d, p2d)

    # Single tiny cross-lane reduce + 1/(2N) scale outside the hot loop.
    return jnp.sum(partials) * inv_2n


def _reference(pair_dist, P, margin, use_robust_loss, start_fine):
    """Direct transcription of the PyTorch module (with the sqrt)."""
    pd = pair_dist.astype(jnp.float32)
    p = P.astype(jnp.float32)
    n = pd.shape[0]
    dist_sq = pd * pd
    if use_robust_loss == 1 and start_fine:
        neg = (1.0 / margin) * jnp.square(
            jnp.maximum(jnp.sqrt(pd) * (margin - pd), 0.0))
    else:
        neg = jnp.square(jnp.maximum(margin - pd, 0.0))
    loss = p * dist_sq + (1.0 - p) * neg
    return jnp.sum(loss) / (2.0 * n)


if __name__ == "__main__":
    key = jax.random.PRNGKey(0)
    margin = 5.0

    # (N, block_rows override, small_n_threshold)
    cases = [
        (256, None, 0),        # tiny, forced through the Pallas path (padded to 8 rows)
        (4096, 16, 0),         # multiple of 128: no pad; multi-block, both grid "cores"
        (5000, 8, 0),          # ragged tail + duplicate-block masking on core 1
        (300, None, 1 << 15),  # auto small-N fallback (plain jnp path)
    ]

    ok = True
    for idx, (N, br, thr) in enumerate(cases):
        k1, k2 = jax.random.split(jax.random.fold_in(key, idx))
        # pair_dist is a Euclidean distance -> nonnegative
        pair_dist = jnp.abs(jax.random.normal(k1, (N,), dtype=jnp.float32)) * 3.0
        P = jax.random.bernoulli(k2, p=0.5, shape=(N,)).astype(jnp.float32)
        for use_robust_loss, start_fine in [(1, True), (1, False), (0, True)]:
            got = noise_robust_loss(pair_dist, P, margin, use_robust_loss,
                                    start_fine, block_rows=br,
                                    small_n_threshold=thr)
            got = jax.block_until_ready(got)
            want = _reference(pair_dist, P, margin, use_robust_loss, start_fine)
            if not jnp.allclose(got, want, rtol=1e-5, atol=1e-5):
                ok = False
                print("MISMATCH", N, use_robust_loss, start_fine,
                      float(got), float(want))

    if ok:
        print("KERNEL_OK")
</pallas_src>

<mosaic_0001>
module attributes {stable_mosaic.version = 11 : i64} {
  func.func @_noise_robust_loss_kernel(%arg0: i32, %arg1: i32, %arg2: memref<8x128xf32, #tpu.memory_space<vmem>>, %arg3: memref<8x128xf32, #tpu.memory_space<vmem>>, %arg4: memref<8x128xf32, #tpu.memory_space<vmem>>) attributes {dimension_semantics = [#tpu.dimension_semantics<parallel>, #tpu.dimension_semantics<arbitrary>], iteration_bounds = array<i64: 2, 1>, scalar_prefetch = 0 : i64, scratch_operands = 0 : i64, tpu.core_type = #tpu.core_type<tc>, window_params = [{transform_indices = @transform_0, window_bounds = array<i64: 8, 128>}, {transform_indices = @transform_1, window_bounds = array<i64: 8, 128>}, {transform_indices = @transform_2, window_bounds = array<i64: 8, 128>}]} {
    %c0_i32 = arith.constant 0 : i32
    %0 = arith.cmpi eq, %arg1, %c0_i32 : i32
    %1 = arith.extui %0 : i1 to i32
    %c0_i32_0 = arith.constant 0 : i32
    %2 = arith.cmpi ne, %1, %c0_i32_0 : i32
    scf.if %2 {
      %cst_17 = arith.constant 0.000000e+00 : f32
      %37 = vector.broadcast %cst_17 : f32 to vector<8x128xf32>
      %c0_18 = arith.constant 0 : index
      %c0_19 = arith.constant 0 : index
      %38 = vector.load %arg4[%c0_18, %c0_19] : memref<8x128xf32, #tpu.memory_space<vmem>>, vector<8x128xf32>
      tpu.vector_store %arg4[%c0_18, %c0_19], %37 {strides = array<i32>} : memref<8x128xf32, #tpu.memory_space<vmem>>, vector<8x128xf32>,
    } else {
    }
    %c0 = arith.constant 0 : index
    %c0_1 = arith.constant 0 : index
    %3 = vector.load %arg2[%c0, %c0_1] : memref<8x128xf32, #tpu.memory_space<vmem>>, vector<8x128xf32>
    %c0_2 = arith.constant 0 : index
    %c0_3 = arith.constant 0 : index
    %4 = vector.load %arg3[%c0_2, %c0_3] : memref<8x128xf32, #tpu.memory_space<vmem>>, vector<8x128xf32>
    %5 = arith.mulf %3, %3 : vector<8x128xf32>
    %6 = arith.mulf %4, %5 : vector<8x128xf32>
    %cst = arith.constant 5.000000e+00 : f32
    %7 = vector.broadcast %cst : f32 to vector<8x128xf32>
    %8 = arith.subf %7, %3 : vector<8x128xf32>
    %cst_4 = arith.constant 0.000000e+00 : f32
    %9 = vector.broadcast %cst_4 : f32 to vector<8x128xf32>
    %10 = arith.maximumf %8, %9 : vector<8x128xf32>
    %11 = arith.mulf %10, %10 : vector<8x128xf32>
    %cst_5 = arith.constant 2.000000e-01 : f32
    %12 = vector.broadcast %cst_5 : f32 to vector<8x128xf32>
    %13 = arith.mulf %12, %3 : vector<8x128xf32>
    %14 = arith.mulf %13, %11 : vector<8x128xf32>
    %cst_6 = arith.constant 1.000000e+00 : f32
    %15 = vector.broadcast %cst_6 : f32 to vector<8x128xf32>
    %16 = arith.subf %15, %4 : vector<8x128xf32>
    %17 = arith.mulf %16, %14 : vector<8x128xf32>
    %18 = arith.addf %6, %17 : vector<8x128xf32>
    %c1_i32 = arith.constant 1 : i32
    %19 = arith.muli %arg0, %c1_i32 : i32
    %20 = arith.addi %19, %arg1 : i32
    %c0_i32_7 = arith.constant 0 : i32
    %21 = arith.minsi %20, %c0_i32_7 : i32
    %c8_i32 = arith.constant 8 : i32
    %22 = arith.muli %21, %c8_i32 : i32
    %23 = tpu.iota {dimensions = array<i32: 0>} : vector<8x128xi32>
    %24 = vector.broadcast %22 : i32 to vector<8x128xi32>
    %25 = arith.addi %24, %23 : vector<8x128xi32>
    %c1_i32_8 = arith.constant 1 : i32
    %26 = arith.cmpi slt, %20, %c1_i32_8 : i32
    %c8_i32_9 = arith.constant 8 : i32
    %c0_i32_10 = arith.constant 0 : i32
    %27 = arith.select %26, %c8_i32_9, %c0_i32_10 : i32
    %28 = vector.broadcast %27 : i32 to vector<8x128xi32>
    %29 = arith.cmpi slt, %25, %28 : vector<8x128xi32>
    %cst_11 = arith.constant 0.000000e+00 : f32
    %30 = vector.broadcast %cst_11 : f32 to vector<8x128xf32>
    %31 = arith.select %29, %18, %30 : vector<8x128xi1>, vector<8x128xf32>
    %c0_12 = arith.constant 0 : index
    %c0_13 = arith.constant 0 : index
    %32 = vector.load %arg4[%c0_12, %c0_13] : memref<8x128xf32, #tpu.memory_space<vmem>>, vector<8x128xf32>
    %33 = vector.shape_cast %31 : vector<8x128xf32> to vector<1x8x128xf32>
    %cst_14 = arith.constant dense<0.000000e+00> : vector<8x128xf32>
    %34 = vector.multi_reduction <add>, %33, %cst_14 [0] : vector<1x8x128xf32> to vector<8x128xf32>
    %35 = arith.addf %32, %34 : vector<8x128xf32>
    %c0_15 = arith.constant 0 : index
    %c0_16 = arith.constant 0 : index
    %36 = vector.load %arg4[%c0_15, %c0_16] : memref<8x128xf32, #tpu.memory_space<vmem>>, vector<8x128xf32>
    tpu.vector_store %arg4[%c0_15, %c0_16], %35 {strides = array<i32>} : memref<8x128xf32, #tpu.memory_space<vmem>>, vector<8x128xf32>,
    return
  }
  func.func @transform_0(%arg0: i32, %arg1: i32) -> (i32, i32) {
    %c1_i32 = arith.constant 1 : i32
    %0 = arith.muli %arg0, %c1_i32 : i32
    %1 = arith.addi %0, %arg1 : i32
    %c0_i32 = arith.constant 0 : i32
    %2 = arith.minsi %1, %c0_i32 : i32
    %c0_i32_0 = arith.constant 0 : i32
    %c0_i32_1 = arith.constant 0 : i32
    return %2, %c0_i32_0 : i32, i32
  }
  func.func @transform_1(%arg0: i32, %arg1: i32) -> (i32, i32) {
    %c1_i32 = arith.constant 1 : i32
    %0 = arith.muli %arg0, %c1_i32 : i32
    %1 = arith.addi %0, %arg1 : i32
    %c0_i32 = arith.constant 0 : i32
    %2 = arith.minsi %1, %c0_i32 : i32
    %c0_i32_0 = arith.constant 0 : i32
    %c0_i32_1 = arith.constant 0 : i32
    return %2, %c0_i32_0 : i32, i32
  }
  func.func @transform_2(%arg0: i32, %arg1: i32) -> (i32, i32) {
    %c0_i32 = arith.constant 0 : i32
    %c0_i32_0 = arith.constant 0 : i32
    return %arg0, %c0_i32 : i32, i32
  }
}

</mosaic_0001>

<bundles_post_ra>
// kernel: tpu_custom_call.1
= control target key start
LH: loop header
LB: loop body
LE: loop exit
PB: predicated region body
PF: predicated region fallthrough
CT: control target
= control target key end

     0   :  { %7 = vsyncpa [#allocation3], 0  ;;  %s881_s0 = inlined_call_operand.hbm [shape: f32[8,128], index: 0, kind: input, shape index: {}]   ;;  %s882_s1 = inlined_call_operand.hbm [shape: f32[8,128], index: 1, kind: input, shape index: {}]   ;;  %s883_s2 = inlined_call_operand.hbm [shape: f32[16,128], index: 2, kind: output, shape index: {}]  }
   0x1   :  { %9 = vsyncpa [#allocation3 + $0x1], 0 }
   0x2   :  { %10 = vsyncpa [#allocation6], 0 }
   0x3   :  { %12 = vsyncpa [#allocation6 + $0x1], 0 }
   0x4   :  { %13 = vsyncpa [#allocation4], 0 }
   0x5   :  { %15 = vsyncpa [#allocation4 + $0x1], 0  ;;  %s677_s9 = smov 0   ;;  %s679_s10 = smov 0  }
   0x6   :  { %s681_s11 = smov 0   ;;  %s683_s12 = smov 0  }
   0x7   :  { %s685_s13 = smov 0   ;;  %s687_s14 = smov 0  }
   0x8   :  { %s689_s15 = smov 0   ;;  %s691_s16 = smov 0  }
   0x9 LB: > { %s381_s17 = sadd.s32 4294967295, %s657_s16   ;;  %s382_s18 = sadd.s32 4294967294, %s657_s16   ;;  %s657_s16 = sphi %s691_s16, %s21_s16   ;;  %s653_s15 = sphi %s689_s15, %s904_s15   ;;  %s649_s14 = sphi %s687_s14, %s903_s14   ;;  %s645_s13 = sphi %s685_s13, %s871_s13   ;;  %s641_s12 = sphi %s683_s12, %s902_s12   ;;  %s637_s11 = sphi %s681_s11, %s901_s11   ;;  %s633_s10 = sphi %s679_s10, %s900_s10   ;;  %s629_s9 = sphi %s677_s9, %s899_s9  }
   0xa   : > { %s33_s19 = sadd.s32 1, %s653_s15  ;;  %p626_p1 = scmp.ne.s32.totalorder %s645_s13, 0 }
   0xb   : > { %p35_p0 = scmp.ge.s32.totalorder %s33_s19, 2  ;;  %p54_p2 = scmp.eq.s32.totalorder %s657_s16, 0 }
   0xc   : > { %p59_p3 = scmp.ne.s32.totalorder %s645_s13, %s641_s12  ;;  %p60_p5 = scmp.eq.s32.totalorder %s381_s17, 0 }
   0xd   : > { %s906_s19 = smov (%p35_p0, %s33_s19), 0  ;;  %p723_p4 = por %p626_p1, %p54_p2 }
   0xe   : > { %p727_p6 = por %p60_p5, %p59_p3  ;;  %s101_s22 = ssub.s32 %s653_s15, %s906_s19 }
   0xf   : > { %p102_p7 = scmp.eq.s32.totalorder %s101_s22, 0  ;;  %s104_s23 = sadd.s32 1, %s637_s11 }
  0x10   : > { %s887_s21 = scalar_select %p727_p6, 1, 0 }
  0x11   : > { %s735_s24 = scalar_select %p102_p7, %s637_s11, %s104_s23  }
  0x12   : > { %p114_p8 = scmp.ne.s32.totalorder %s637_s11, %s633_s10  ;;  %p115_p9 = scmp.eq.s32.totalorder %s381_s17, 1 }
  0x13   : > { %p120_p10 = scmp.ne.s32.totalorder %s633_s10, %s629_s9  ;;  %p121_p11 = scmp.eq.s32.totalorder %s382_s18, 1 }
  0x14   : > { %p741_p12 = por %p115_p9, %p114_p8  ;;  %p415_p1 = scmp.lt.s32.totalorder %s657_s16, 2 }
  0x15   : > { %p746_p0 = por %p121_p11, %p120_p10  ;;  %s659_s27 = smov [#allocation2]  }
  0x16   : > { %s888_s25 = scalar_select %p741_p12, 1, 0 }
  0x17   : > { %s889_s26 = scalar_select %p746_p0, 1, 0 }
  0x18   : > { %s155_s28 = sshll.u32 %s659_s27, 4  ;;  %p753_p2 = pnand %p415_p1, %p723_p4  ;;  %s156_s28 = int_to_ptr.vmem [resolvable:$true] %s155_s28 }
  0x19   : > { %s490_s4 = scalar_lea.hbm %s881_s0, 128 }
  0x1a   : > { %p491_p7 = scmp.ne.s32.totalorder %s881_s0, %s490_s4  ;;  %p492_p8 = pneg %p753_p2 }
  0x1b   : > { %p497_p10 = scmp.lt.u32.totalorder %s490_s4, %s490_s4  ;;  %p499_p11 = scmp.lt.u32.totalorder %s490_s4, %s881_s0 }
  0x1c   : > { %p493_p4 = pnand %p492_p8, %p491_p7 }
  0x1d   : > { %p500_p1 = por %p499_p11, %p497_p10 }
  0x1e   : > { %p494_p9 = pneg %p493_p4 }
  0x20   : > { %p501_p13 = pnand %p500_p1, %p494_p9 }
  0x22   : > { %504 = shalt.err (!%p501_p13)
}
  0x23   : > { %s505_s12 = scalar_lea.vmem %s156_s28, 128  ;;  %s512_s17 = scalar_lea.vmem %s156_s28, 256 }
  0x24   : > { %p506_p3 = scmp.ne.s32.totalorder %s156_s28, %s505_s12  ;;  %p513_p12 = scmp.lt.s32.totalorder %s156_s28, %s156_s28 }
  0x25   : > { %p514_p6 = scmp.lt.s32.totalorder %s512_s17, %s505_s12 }
  0x26   : > { %p508_p5 = pnand %p506_p3, %p492_p8 }
  0x27   : > { %p515_p7 = por %p514_p6, %p513_p12 }
  0x28   : > { %p509_p0 = pneg %p508_p5 }
  0x2a   : > { %p516_p4 = pnand %p515_p7, %p509_p0 }
  0x2c   : > { %519 = shalt.err (!%p516_p4)
}
  0x2d   : > { %407 = dma.hbm_to_vmem [thread:$0]  (!%p753_p2), %s881_s0, 128, %s156_s28, [#allocation3]  }
  0x2e   : > { %p891_p13 = scmp.lt.s32.totalorder %s657_s16, 3  ;;  %p892_p9 = scmp.ge.s32.totalorder %s657_s16, 1 }
  0x2f   : > { %s660_s23 = smov [#allocation5]   ;;  %s520_s4 = scalar_lea.hbm %s882_s1, 128 }
  0x30   : > { %p785_p10 = pnand %p892_p9, %p891_p13  ;;  %s176_s27 = sshll.u32 %s660_s23, 4  ;;  %s177_s27 = int_to_ptr.vmem [resolvable:$true] %s176_s27 }
  0x31   : > { %p521_p6 = scmp.ne.s32.totalorder %s882_s1, %s520_s4  ;;  %p527_p3 = scmp.lt.u32.totalorder %s520_s4, %s520_s4 }
  0x32   : > { %s893_s22 = scalar_select %p785_p10, 1, 0 }
  0x33   : > { %p523_p12 = pnand %p521_p6, %p492_p8  ;;  %p529_p5 = scmp.lt.u32.totalorder %s520_s4, %s882_s1 }
  0x35   : > { %p524_p0 = pneg %p523_p12  ;;  %p530_p11 = por %p529_p5, %p527_p3 }
  0x37   : > { %p531_p1 = pnand %p530_p11, %p524_p0 }
  0x39   : > { %534 = shalt.err (!%p531_p1)
}
  0x3a   : > { %s535_s8 = scalar_lea.vmem %s177_s27, 128  ;;  %s542_s12 = scalar_lea.vmem %s177_s27, 256 }
  0x3b   : > { %p536_p7 = scmp.ne.s32.totalorder %s177_s27, %s535_s8  ;;  %p543_p9 = scmp.lt.s32.totalorder %s177_s27, %s177_s27 }
  0x3c   : > { %p544_p10 = scmp.lt.s32.totalorder %s542_s12, %s535_s8 }
  0x3d   : > { %p538_p4 = pnand %p536_p7, %p492_p8 }
  0x3e   : > { %p545_p6 = por %p544_p10, %p543_p9 }
  0x3f   : > { %p539_p13 = pneg %p538_p4 }
  0x41   : > { %p546_p12 = pnand %p545_p6, %p539_p13 }
  0x43   : > { %549 = shalt.err (!%p546_p12)
}
  0x44   : > { %410 = dma.hbm_to_vmem [thread:$0]  (!%p753_p2), %s882_s1, 128, %s177_s27, [#allocation6]  }
  0x45   : > { %p894_p0 = scmp.ne.s32.totalorder %s893_s22, 0 }
  0x46   : > { %s187_s20 = sand.u32 (!%p894_p0), 1, %s645_s13   ;;  %p895_p8 = scmp.ne.s32.totalorder (!%p894_p0), %s887_s21, 0 }
  0x47   : > { %185 = sbr.rel (%p894_p0) target bundleno = 111 (0x6f), region = 28  ;;  %s390_s23 = sshll.u32 (!%p894_p0), %s187_s20, 3 }
  0x48   : > { %s188_s30 = scalar_lea.sflag (!%p894_p0), [#allocation3], %s187_s20  ;;  %s191_s3 = scalar_lea.vmem (!%p894_p0), [#allocation2], %s390_s23 }
  0x4e   : > { %615 = dma.done.wait (%p895_p8), %s188_s30, 128  }
  0x4f   : > { %617 = vsyncadd (%p895_p8), %s188_s30, 4294967168  ;;  %s197_s29 = scalar_lea.sflag [#allocation6], %s187_s20  ;;  %s200_s4 = scalar_lea.vmem [#allocation5], %s390_s23 }
  0x50   : > { %619 = dma.done.wait (%p895_p8), %s197_s29, 128  }
  0x51   : > { %621 = vsyncadd (%p895_p8), %s197_s29, 4294967168  ;;  %p250_p2 = scmp.lt.s32.totalorder %s649_s14, 0  ;;  %v253_v0 = vlaneseq  ;;  %p257_p10 = scmp.lt.s32.totalorder %s649_s14, 1  ;;  %v237_v1 = vld [vmem:[%s191_s3] sm:$0xff]  ;;  %v238_v3 = vld [vmem:[%s200_s4] sm:$0xff] }
  0x52   : > { %v241_v2 = vsub.f32 5.0, %v237_v1  ;;  %s223_s5 = sand.u32 1, %s633_s10   ;;  %v239_v5 = vmul.f32 %v237_v1, %v237_v1  ;;  %v244_v7 = vmul.f32 0.2, %v237_v1  ;;  %v246_v10 = vsub.f32 1.0, %v238_v3  ;;  %s395_s28 = sshll.u32 %s649_s14, 7 }
  0x53   : > { %s251_s22 = scalar_select %p250_p2, %s649_s14, 0  ;;  %v254_v4 = vshrl.u32 %v253_v0, 7 }
  0x54   : > { %v242_v6 = vmax.f32 %v241_v2, 0.0  ;;  %s258_s21 = scalar_select %p257_p10, 8, 0  ;;  %v240_v12 = vmul.f32 %v239_v5, %v238_v3 }
  0x55   : > { %s393_s27 = sshll.u32 %s251_s22, 3  ;;  %s392_s6 = sshll.u32 %s223_s5, 3 }
  0x56   : > { %v255_v8 = vstv %s393_s27  ;;  %v243_v9 = vmul.f32 %v242_v6, %v242_v6  ;;  %v259_v14 = vstv %s258_s21  ;;  %s225_s7 = scalar_lea.vmem [#allocation7], %s392_s6  ;;  %s828_s18 = scalar_lea.hbm %s883_s2, %s395_s28 }
  0x57   : > { %v256_v11 = vadd.s32 %v255_v8, %v254_v4  ;;  %s280_s8 = sshll.u32 %s225_s7, 4  ;;  %s267_s20 = scalar_lea.sflag [#allocation4], %s223_s5  ;;  %s830_s8 = int_to_ptr.vmem [resolvable:$true] %s280_s8 }
  0x58   : > { %v245_v13 = vmul.f32 %v244_v7, %v243_v9  ;;  %s550_s23 = scalar_lea.vmem %s830_s8, 128  ;;  %p896_p5 = scmp.ne.s32.totalorder %s888_s25, 0 }
  0x59   : > { %vm260_vm0 = vcmp.lt.s32.totalorder %v256_v11, %v259_v14  ;;  %p551_p3 = scmp.ne.s32.totalorder %s830_s8, %s550_s23  ;;  %s661_s14 = smov [#allocation7]  }
  0x5a   : > { %v247_v15 = vmul.f32 %v246_v10, %v245_v13  ;;  %s554_s30 = sshll.u32 %s661_s14, 4  ;;  %s555_s30 = int_to_ptr.vmem [resolvable:$false] %s554_s30 }
  0x5b   : > { %p552_p11 = pnand %p551_p3, %p896_p5  ;;  %s556_s3 = scalar_lea.vmem %s555_s30, 256 }
  0x5c   : > { %v248_v16 = vadd.f32 %v247_v15, %v240_v12  ;;  %p557_p7 = scmp.lt.s32.totalorder %s830_s8, %s555_s30  ;;  %p558_p4 = scmp.lt.s32.totalorder %s556_s3, %s550_s23 }
  0x5d   : > { %p553_p1 = pneg %p552_p11 }
  0x5e   : > { %v261_v17 = vsel %vm260_vm0, %v248_v16, 0.0  ;;  %p559_p13 = por %p558_p4, %p557_p7 }
  0x5f   : > { %265 = vst [vmem:[%s225_s7] sm:$0xff] %v261_v17 }
  0x60   : > { %p560_p9 = pnand %p559_p13, %p553_p1 }
  0x62   : > { %563 = shalt.err (!%p560_p9)
}
  0x63   : > { %s564_s29 = scalar_lea.hbm %s828_s18, 128  ;;  %s568_s27 = scalar_lea.hbm %s883_s2, 256 }
  0x64   : > { %p565_p6 = scmp.ne.s32.totalorder %s828_s18, %s564_s29  ;;  %p569_p8 = scmp.lt.u32.totalorder %s828_s18, %s883_s2 }
  0x65   : > { %p570_p2 = scmp.lt.u32.totalorder %s568_s27, %s564_s29  ;;  %p572_p3 = scmp.lt.u32.totalorder %s564_s29, %s828_s18 }
  0x66   : > { %p566_p12 = pnand %p565_p6, %p896_p5 }
  0x67   : > { %p571_p10 = por %p570_p2, %p569_p8 }
  0x68   : > { %p567_p0 = pneg %p566_p12 }
  0x69   : > { %p573_p11 = por %p572_p3, %p571_p10 }
  0x6b   : > { %p574_p1 = pnand %p573_p11, %p567_p0 }
  0x6d   : > { %577 = shalt.err (!%p574_p1)
}
  0x6e   : > { %402 = dma.vmem_to_hbm [thread:$0]  (%p896_p5), %s830_s8, 128, %s828_s18, %s267_s20  }
  0x6f PF: > { %s292_s6 = sand.u32 1, %s629_s9   ;;  %p897_p7 = scmp.ne.s32.totalorder %s889_s26, 0 }
  0x70   : > { %p898_p4 = scmp.ge.s32.totalorder %s657_s16, 2  ;;  %s293_s28 = scalar_lea.sflag [#allocation4], %s292_s6 }
  0x72   : > { %p412_p13 = pnand %p898_p4, %p897_p7 }
  0x74   : > { %623 = dma.done.wait (!%p412_p13), %s293_s28, 128  }
  0x75   : > { %625 = vsyncadd (!%p412_p13), %s293_s28, 4294967168  ;;  %s21_s16 = sadd.s32 1, %s657_s16   ;;  %s899_s9 = smov %s633_s10 }
  0x76   : > { %p18_p9 = scmp.ge.s32.totalorder %s21_s16, 4   ;;  %s900_s10 = smov %s637_s11 }
  0x77   : > { %s901_s11 = smov %s735_s24  ;;  %s902_s12 = smov %s645_s13 }
  0x78   : > { %s871_s13 = smov 0   ;;  %s903_s14 = smov %s653_s15 }
  0x79   : > { %s904_s15 = smov %s906_s19  ;;  %20 = sbr.rel (!%p18_p9) target bundleno = 9 (0x9), region = 90 }
  0x80   :  { %298 = vsyncpa [#allocation3], 1 }
  0x81   :  { %300 = vsyncpa [#allocation3 + $0x1], 1 }
  0x82   :  { %301 = vsyncpa [#allocation6], 1 }
  0x83   :  { %303 = vsyncpa [#allocation6 + $0x1], 1 }
  0x84   :  { %304 = vsyncpa [#allocation4], 1 }
  0x85   :  { %306 = vsyncpa [#allocation4 + $0x1], 1 }

</bundles_post_ra>
